<compile_context>
chip_gen: v5e
topology: v5e:2x2
jax: 0.10.0
libtpu: 0.0.40
codegen_flags: <defaults>
</compile_context>

<pallas_src>
import math

import jax
import jax.numpy as jnp
from jax import lax
from jax.experimental import pallas as pl
from jax.experimental.pallas import tpu as pltpu


_VMEM_LIMIT = 48 * 1024 * 1024  # > default scoped limit on v5e/v6e/v7x, < physical on all


# ---------------------------------------------------------------------------
# helpers
# ---------------------------------------------------------------------------
def _pick_tile(dim, target, base):
    """Largest multiple of `base` that divides `dim` and is <= `target`.

    Falls back to the full dim (full-extent blocks are always legal and need no
    (8, 128) alignment), so every grid extent is an exact divisor.
    TODO(synk): for very long sequences with no small divisor this falls back to
    a full-axis block; padding + in-kernel masking would bound VMEM instead.
    """
    if dim <= target:
        return dim
    t = (target // base) * base
    while t >= base:
        if dim % t == 0:
            return t
        t -= base
    return dim


# contract the last (K) axis of x with the last (K) axis of W -> x @ W.T, no transpose
_TRANS_B_DIMS = (((1,), (1,)), ((), ()))


# ---------------------------------------------------------------------------
# Tiled linear kernel:  y = x @ W.T + b    (W stored PyTorch-style (out, in))
# ---------------------------------------------------------------------------
def _linear_kernel(x_ref, w_ref, b_ref, o_ref, acc_ref):
    k = pl.program_id(2)

    @pl.when(k == 0)
    def _init():
        acc_ref[...] = jnp.zeros_like(acc_ref)

    acc_ref[...] += lax.dot_general(
        x_ref[...], w_ref[...], _TRANS_B_DIMS, preferred_element_type=jnp.float32)

    @pl.when(k == pl.num_programs(2) - 1)
    def _finalize():
        o_ref[...] = (acc_ref[...] + b_ref[...].astype(jnp.float32)).astype(o_ref.dtype)


def linear(x, w, b, *, tm=512, tn=512, tk=1024):
    """x: (M, K), w: (N, K), b: (N,) -> (M, N)."""
    M, K = x.shape
    N = w.shape[0]
    tm = _pick_tile(M, tm, 8)
    tn = _pick_tile(N, tn, 128)
    tk = _pick_tile(K, tk, 128)
    grid = (M // tm, N // tn, K // tk)
    cost = pl.CostEstimate(
        flops=int(2 * M * N * K), transcendentals=0,
        bytes_accessed=int((M * K + N * K + M * N + N) * x.dtype.itemsize))
    return pl.pallas_call(
        _linear_kernel,
        out_shape=jax.ShapeDtypeStruct((M, N), x.dtype),
        grid=grid,
        in_specs=[
            pl.BlockSpec((tm, tk), lambda i, j, k: (i, k)),
            pl.BlockSpec((tn, tk), lambda i, j, k: (j, k)),
            pl.BlockSpec((1, tn), lambda i, j, k: (0, j)),
        ],
        out_specs=pl.BlockSpec((tm, tn), lambda i, j, k: (i, j)),
        scratch_shapes=[pltpu.VMEM((tm, tn), jnp.float32)],
        compiler_params=pltpu.CompilerParams(
            dimension_semantics=("parallel", "parallel", "arbitrary"),
            vmem_limit_bytes=_VMEM_LIMIT),
        cost_estimate=cost,
    )(x, w, b.reshape(1, N))


def fused_qkv_linear(x, w_fused, b_fused, d_model, *, tm=512, tn=512, tk=1024):
    """Fused Q/K/V projection (self-attention path).

    x: (M, d_model), w_fused: (3*d_model, d_model) = concat([W_Q*scale, W_K, W_V]),
    b_fused: (3, d_model).  Returns (3, M, d_model) with [0]=Q, [1]=K, [2]=V;
    x is read from HBM once for all three projections.
    """
    M, K = x.shape
    tm = _pick_tile(M, tm, 8)
    tn = _pick_tile(d_model, tn, 128)   # tn divides d_model: N-blocks never straddle projections
    tk = _pick_tile(K, tk, 128)
    npb = d_model // tn                 # N-blocks per projection
    grid = (M // tm, 3 * npb, K // tk)
    N = 3 * d_model
    cost = pl.CostEstimate(
        flops=int(2 * M * N * K), transcendentals=0,
        bytes_accessed=int((M * K + N * K + M * N + N) * x.dtype.itemsize))
    return pl.pallas_call(
        _linear_kernel,
        out_shape=jax.ShapeDtypeStruct((3, M, d_model), x.dtype),
        grid=grid,
        in_specs=[
            pl.BlockSpec((tm, tk), lambda i, j, k: (i, k)),
            pl.BlockSpec((tn, tk), lambda i, j, k: (j, k)),
            pl.BlockSpec((None, 1, tn), lambda i, j, k: (j // npb, 0, j % npb)),
        ],
        out_specs=pl.BlockSpec((None, tm, tn),
                               lambda i, j, k: (j // npb, i, j % npb)),
        scratch_shapes=[pltpu.VMEM((tm, tn), jnp.float32)],
        compiler_params=pltpu.CompilerParams(
            dimension_semantics=("parallel", "parallel", "arbitrary"),
            vmem_limit_bytes=_VMEM_LIMIT),
        cost_estimate=cost,
    )(x, w_fused, b_fused.reshape(3, 1, d_model))


# ---------------------------------------------------------------------------
# Flash-style scaled dot-product attention
# ---------------------------------------------------------------------------
def _qkv_src_spec(arr_ndim, proj, tile, d_model, is_kv):
    """BlockSpec for one attention operand.

    Source is either the stacked (3, B, S, d_model) fused-QKV buffer (proj
    selects Q/K/V) or a plain (B, S, d_model) projection.  Heads live in the
    d_model (lane) axis and are sliced inside the kernel.
    """
    if arr_ndim == 4:
        def imap(b, qi, ki, _p=proj, _kv=is_kv):
            return (_p, b, ki if _kv else qi, 0)
        return pl.BlockSpec((None, None, tile, d_model), imap)

    def imap(b, qi, ki, _kv=is_kv):
        return (b, ki if _kv else qi, 0)
    return pl.BlockSpec((None, tile, d_model), imap)


def _make_flash_kernel(n_heads, d_k, with_lse):
    # NOTE: q is already scaled by 1/sqrt(d_k) (folded into W_Q at prepare time).
    # TODO(synk): optional attention mask (masked_fill with -inf before the
    #             running-max update) is not implemented; forward uses mask=None.
    def body(q_ref, k_ref, v_ref, o_ref, lse_ref, m_ref, l_ref, acc_ref):
        ki = pl.program_id(2)

        @pl.when(ki == 0)
        def _init():
            m_ref[...] = jnp.full_like(m_ref, -jnp.inf)
            l_ref[...] = jnp.zeros_like(l_ref)
            acc_ref[...] = jnp.zeros_like(acc_ref)

        q = q_ref[...]                   # (tq, d_model)
        k = k_ref[...]                   # (tkv, d_model)
        v = v_ref[...]                   # (tkv, d_model)
        m_all = m_ref[...]               # (tq, n_heads)
        l_all = l_ref[...]               # (tq, n_heads)
        tq = q.shape[0]

        m_cols, l_cols, alpha_wide, pv_parts = [], [], [], []
        for h in range(n_heads):         # static unroll; heads = static lane slices
            sl = slice(h * d_k, (h + 1) * d_k)
            s = lax.dot_general(q[:, sl], k[:, sl], _TRANS_B_DIMS,
                                preferred_element_type=jnp.float32)   # (tq, tkv)
            m_prev = m_all[:, h:h + 1]
            m_new = jnp.maximum(m_prev, jnp.max(s, axis=-1, keepdims=True))
            alpha = jnp.exp(m_prev - m_new)
            p = jnp.exp(s - m_new)
            m_cols.append(m_new)
            l_cols.append(alpha * l_all[:, h:h + 1] + jnp.sum(p, axis=-1, keepdims=True))
            alpha_wide.append(jnp.broadcast_to(alpha, (tq, d_k)))
            pv_parts.append(jnp.dot(p.astype(v.dtype), v[:, sl],
                                    preferred_element_type=jnp.float32))

        # dense, lane-wide state updates (no per-head masked stores)
        m_ref[...] = jnp.concatenate(m_cols, axis=-1)
        l_ref[...] = jnp.concatenate(l_cols, axis=-1)
        acc_ref[...] = (jnp.concatenate(alpha_wide, axis=-1) * acc_ref[...]
                        + jnp.concatenate(pv_parts, axis=-1))

        @pl.when(ki == pl.num_programs(2) - 1)
        def _finalize():
            l = l_ref[...]
            inv = pl.reciprocal(l, approx=True)
            inv = inv * (2.0 - l * inv)      # one Newton step -> ~f32 accuracy
            inv_wide = jnp.concatenate(
                [jnp.broadcast_to(inv[:, h:h + 1], (tq, d_k)) for h in range(n_heads)],
                axis=-1)
            o_ref[...] = (acc_ref[...] * inv_wide).astype(o_ref.dtype)   # one dense store
            if lse_ref is not None:
                lse_ref[...] = m_ref[...] + jnp.log(l)                   # (tq, n_heads)

    if with_lse:
        def kernel(q_ref, k_ref, v_ref, o_ref, lse_ref, m_ref, l_ref, acc_ref):
            body(q_ref, k_ref, v_ref, o_ref, lse_ref, m_ref, l_ref, acc_ref)
    else:
        def kernel(q_ref, k_ref, v_ref, o_ref, m_ref, l_ref, acc_ref):
            body(q_ref, k_ref, v_ref, o_ref, None, m_ref, l_ref, acc_ref)
    return kernel


def flash_attention(q_src, k_src, v_src, n_heads, *, with_lse=True, tq=256, tkv=256):
    """Online-softmax attention over KV tiles.

    q_src/k_src/v_src are (array, proj_index) pairs (stacked fused-QKV buffer or
    plain per-projection arrays).  q is expected to be pre-scaled by 1/sqrt(d_k).
    Returns (output (B, Sq, d_model), logsumexp (B, Sq, n_heads) f32 or None).
    """
    q_arr, q_p = q_src
    k_arr, k_p = k_src
    v_arr, v_p = v_src
    B, Sq, d_model = q_arr.shape[-3], q_arr.shape[-2], q_arr.shape[-1]
    Sk = k_arr.shape[-2]
    d_k = d_model // n_heads
    tq = _pick_tile(Sq, tq, 8)
    tkv = _pick_tile(Sk, tkv, 128)
    grid = (B, Sq // tq, Sk // tkv)   # v7x: B*(Sq//tq) parallel units feed both TensorCores

    kernel = _make_flash_kernel(n_heads, d_k, with_lse)
    itemsize = q_arr.dtype.itemsize
    lse_bytes = B * Sq * n_heads * 4 if with_lse else 0
    cost = pl.CostEstimate(
        flops=int(4 * B * Sq * Sk * d_model),
        transcendentals=int(B * n_heads * Sq * Sk),
        bytes_accessed=int((2 * B * Sq * d_model + 2 * B * Sk * d_model) * itemsize
                           + lse_bytes))

    in_specs = [
        _qkv_src_spec(q_arr.ndim, q_p, tq, d_model, is_kv=False),
        _qkv_src_spec(k_arr.ndim, k_p, tkv, d_model, is_kv=True),
        _qkv_src_spec(v_arr.ndim, v_p, tkv, d_model, is_kv=True),
    ]
    scratch = [
        pltpu.VMEM((tq, n_heads), jnp.float32),   # running max m  (heads in lanes)
        pltpu.VMEM((tq, n_heads), jnp.float32),   # running sum l
        pltpu.VMEM((tq, d_model), jnp.float32),   # output accumulator (lane-dense)
    ]
    cparams = pltpu.CompilerParams(
        dimension_semantics=("parallel", "parallel", "arbitrary"),
        vmem_limit_bytes=_VMEM_LIMIT)

    o_shape = jax.ShapeDtypeStruct((B, Sq, d_model), q_arr.dtype)
    o_spec = pl.BlockSpec((None, tq, d_model), lambda b, qi, ki: (b, qi, 0))

    if with_lse:
        out, lse = pl.pallas_call(
            kernel,
            out_shape=(o_shape, jax.ShapeDtypeStruct((B, Sq, n_heads), jnp.float32)),
            grid=grid,
            in_specs=in_specs,
            out_specs=(o_spec,
                       pl.BlockSpec((None, tq, n_heads), lambda b, qi, ki: (b, qi, 0))),
            scratch_shapes=scratch,
            compiler_params=cparams,
            cost_estimate=cost,
        )(q_arr, k_arr, v_arr)
        return out, lse

    out = pl.pallas_call(
        kernel,
        out_shape=o_shape,
        grid=grid,
        in_specs=in_specs,
        out_specs=o_spec,
        scratch_shapes=scratch,
        compiler_params=cparams,
        cost_estimate=cost,
    )(q_arr, k_arr, v_arr)
    return out, None


def _make_weights_kernel(n_heads, d_k):
    def kernel(q_ref, k_ref, lse_ref, w_ref):
        q = q_ref[...]                    # already scaled
        k = k_ref[...]
        lse = lse_ref[...]                # (tq, n_heads)
        for h in range(n_heads):
            sl = slice(h * d_k, (h + 1) * d_k)
            s = lax.dot_general(q[:, sl], k[:, sl], _TRANS_B_DIMS,
                                preferred_element_type=jnp.float32)
            w_ref[h] = jnp.exp(s - lse[:, h:h + 1]).astype(w_ref.dtype)
    return kernel


def attention_weights(q_src, k_src, lse, n_heads, out_dtype, *, tq=128, tkv=256):
    """softmax(QK^T / sqrt(d_k)), recomputed tile-by-tile from the flash logsumexp.

    Only called when the O(S^2) weights tensor is actually needed.
    """
    q_arr, q_p = q_src
    k_arr, k_p = k_src
    B, Sq, d_model = q_arr.shape[-3], q_arr.shape[-2], q_arr.shape[-1]
    Sk = k_arr.shape[-2]
    d_k = d_model // n_heads
    tq = _pick_tile(Sq, tq, 8)
    tkv = _pick_tile(Sk, tkv, 128)
    grid = (B, Sq // tq, Sk // tkv)

    kernel = _make_weights_kernel(n_heads, d_k)
    cost = pl.CostEstimate(
        flops=int(2 * B * Sq * Sk * d_model),
        transcendentals=int(B * n_heads * Sq * Sk),
        bytes_accessed=int(B * n_heads * Sq * Sk * jnp.dtype(out_dtype).itemsize))

    return pl.pallas_call(
        kernel,
        out_shape=jax.ShapeDtypeStruct((B, n_heads, Sq, Sk), out_dtype),
        grid=grid,
        in_specs=[
            _qkv_src_spec(q_arr.ndim, q_p, tq, d_model, is_kv=False),
            _qkv_src_spec(k_arr.ndim, k_p, tkv, d_model, is_kv=True),
            pl.BlockSpec((None, tq, n_heads), lambda b, qi, ki: (b, qi, 0)),
        ],
        out_specs=pl.BlockSpec((None, n_heads, tq, tkv),
                               lambda b, qi, ki: (b, 0, qi, ki)),
        compiler_params=pltpu.CompilerParams(
            dimension_semantics=("parallel", "parallel", "parallel"),
            vmem_limit_bytes=_VMEM_LIMIT),
        cost_estimate=cost,
    )(q_arr, k_arr, lse)


# ---------------------------------------------------------------------------
# Parameters
# ---------------------------------------------------------------------------
def init_mha_params(key, d_model):
    """Deterministic parameter init; PyTorch Linear layout (out, in)."""
    keys = jax.random.split(key, 8)
    bound = 1.0 / math.sqrt(d_model)

    def u(kk, shape):
        return jax.random.uniform(kk, shape, jnp.float32, -bound, bound)

    return {
        "W_Q_w": u(keys[0], (d_model, d_model)), "W_Q_b": u(keys[1], (d_model,)),
        "W_K_w": u(keys[2], (d_model, d_model)), "W_K_b": u(keys[3], (d_model,)),
        "W_V_w": u(keys[4], (d_model, d_model)), "W_V_b": u(keys[5], (d_model,)),
        "fc_w":  u(keys[6], (d_model, d_model)), "fc_b":  u(keys[7], (d_model,)),
    }


def prepare_mha_params(params, n_heads):
    """One-time prep: fold 1/sqrt(d_k) into W_Q/b_Q and pre-concatenate the
    fused QKV weights so nothing is concatenated/rescaled per forward call."""
    d_model = params["W_Q_w"].shape[0]
    scale = 1.0 / math.sqrt(d_model // n_heads)
    wq = params["W_Q_w"] * scale
    bq = params["W_Q_b"] * scale
    prepared = dict(params)
    prepared["W_Qs_w"] = wq
    prepared["W_Qs_b"] = bq
    prepared["qkv_w"] = jnp.concatenate([wq, params["W_K_w"], params["W_V_w"]], axis=0)
    prepared["qkv_b"] = jnp.stack([bq, params["W_K_b"], params["W_V_b"]], axis=0)
    return prepared


# ---------------------------------------------------------------------------
# MultiHeadAttention forward
# ---------------------------------------------------------------------------
def multi_head_attention(params, q, k, v, n_heads, *, return_weights=True,
                         compute_dtype=None):
    """q: (B, Sq, d_model), k/v: (B, Sk, d_model).

    Returns (output (B, Sq, d_model), attn_weights (B, H, Sq, Sk) or None).
    Pass return_weights=False (inference) to skip the logsumexp output and the
    O(S^2) weights kernel entirely.  compute_dtype=jnp.bfloat16 casts
    activations/weights for the MXU while keeping f32 accumulation.
    """
    # TODO(synk): optional `mask` argument (masked_fill with -inf before softmax)
    #             is not implemented; the reference forward is exercised with mask=None.
    self_attn = (k is q) and (v is q)   # NOTE: identity check — equal-but-distinct
                                        # tensors take the (correct) unfused path.
    if compute_dtype is not None:
        params = jax.tree_util.tree_map(lambda t: t.astype(compute_dtype), params)
        q = q.astype(compute_dtype)
        if self_attn:
            k = v = q
        else:
            k = k.astype(compute_dtype)
            v = v.astype(compute_dtype)

    B, Sq, d_model = q.shape
    Sk = k.shape[1]
    assert d_model % n_heads == 0
    scale = 1.0 / math.sqrt(d_model // n_heads)

    if self_attn:
        # Self-attention: one fused projection — x is read from HBM once.
        w_fused = params.get("qkv_w")
        b_fused = params.get("qkv_b")
        if w_fused is None:   # fallback if caller skipped prepare_mha_params
            w_fused = jnp.concatenate(
                [params["W_Q_w"] * scale, params["W_K_w"], params["W_V_w"]], axis=0)
            b_fused = jnp.stack(
                [params["W_Q_b"] * scale, params["W_K_b"], params["W_V_b"]], axis=0)
        qkv = fused_qkv_linear(q.reshape(B * Sq, d_model), w_fused, b_fused, d_model)
        qkv = qkv.reshape(3, B, Sq, d_model)
        q_src, k_src, v_src = (qkv, 0), (qkv, 1), (qkv, 2)
    else:
        wq = params.get("W_Qs_w", params["W_Q_w"] * scale)
        bq = params.get("W_Qs_b", params["W_Q_b"] * scale)
        Qp = linear(q.reshape(B * Sq, d_model), wq, bq)
        Kp = linear(k.reshape(B * Sk, d_model), params["W_K_w"], params["W_K_b"])
        Vp = linear(v.reshape(B * Sk, d_model), params["W_V_w"], params["W_V_b"])
        q_src = (Qp.reshape(B, Sq, d_model), 0)
        k_src = (Kp.reshape(B, Sk, d_model), 0)
        v_src = (Vp.reshape(B, Sk, d_model), 0)

    # attention output comes back directly in (B, Sq, d_model) — no head merge pass
    attn_out, lse = flash_attention(q_src, k_src, v_src, n_heads,
                                    with_lse=return_weights)

    out = linear(attn_out.reshape(B * Sq, d_model), params["fc_w"], params["fc_b"])
    out = out.reshape(B, Sq, d_model)

    attn_w = None
    if return_weights:
        attn_w = attention_weights(q_src, k_src, lse, n_heads, q.dtype)
    return out, attn_w


# ---------------------------------------------------------------------------
# Reference (plain JAX) for sanity checking
# ---------------------------------------------------------------------------
def mha_reference(params, q, k, v, n_heads):
    B, Sq, d_model = q.shape
    Sk = k.shape[1]
    d_k = d_model // n_heads

    def lin(x, w, b):
        return x @ w.T + b

    Q = lin(q, params["W_Q_w"], params["W_Q_b"]).reshape(B, Sq, n_heads, d_k).transpose(0, 2, 1, 3)
    K = lin(k, params["W_K_w"], params["W_K_b"]).reshape(B, Sk, n_heads, d_k).transpose(0, 2, 1, 3)
    V = lin(v, params["W_V_w"], params["W_V_b"]).reshape(B, Sk, n_heads, d_k).transpose(0, 2, 1, 3)
    scores = jnp.einsum("bhqd,bhkd->bhqk", Q, K) / math.sqrt(d_k)
    w = jax.nn.softmax(scores, axis=-1)
    o = jnp.einsum("bhqk,bhkd->bhqd", w, V)
    o = o.transpose(0, 2, 1, 3).reshape(B, Sq, d_model)
    return lin(o, params["fc_w"], params["fc_b"]), w


if __name__ == "__main__":
    B, S, d_model, n_heads = 2, 8, 32, 4

    key = jax.random.PRNGKey(0)
    kq, kk, kv_, kp = jax.random.split(key, 4)
    q = jax.random.normal(kq, (B, S, d_model), jnp.float32)
    k = jax.random.normal(kk, (B, S, d_model), jnp.float32)
    v = jax.random.normal(kv_, (B, S, d_model), jnp.float32)
    params = init_mha_params(kp, d_model)
    prepared = prepare_mha_params(params, n_heads)

    # 1) distinct q/k/v  -> three separate tiled projections, with attn weights
    out, attn = multi_head_attention(prepared, q, k, v, n_heads)
    out = jax.block_until_ready(out)
    attn = jax.block_until_ready(attn)
    ref_out, ref_attn = mha_reference(params, q, k, v, n_heads)
    assert out.shape == (B, S, d_model)
    assert attn.shape == (B, n_heads, S, S)
    assert jnp.allclose(out, ref_out, atol=2e-4, rtol=2e-4)
    assert jnp.allclose(attn, ref_attn, atol=2e-4, rtol=2e-4)

    # 2) self-attention (same tensor) -> fused QKV projection path
    out2, attn2 = multi_head_attention(prepared, q, q, q, n_heads)
    out2 = jax.block_until_ready(out2)
    ref_out2, ref_attn2 = mha_reference(params, q, q, q, n_heads)
    assert jnp.allclose(out2, ref_out2, atol=2e-4, rtol=2e-4)
    assert jnp.allclose(attn2, ref_attn2, atol=2e-4, rtol=2e-4)

    # 3) inference path: no lse output, no weights kernel
    out3, attn3 = multi_head_attention(prepared, q, k, v, n_heads, return_weights=False)
    out3 = jax.block_until_ready(out3)
    assert attn3 is None
    assert jnp.allclose(out3, ref_out, atol=2e-4, rtol=2e-4)

    print("KERNEL_OK")
</pallas_src>

<mosaic_0001>
module attributes {stable_mosaic.version = 11 : i64} {
  func.func @_linear_kernel(%arg0: i32, %arg1: i32, %arg2: i32, %arg3: memref<16x32xf32, #tpu.memory_space<vmem>>, %arg4: memref<32x32xf32, #tpu.memory_space<vmem>>, %arg5: memref<1x32xf32, #tpu.memory_space<vmem>>, %arg6: memref<16x32xf32, #tpu.memory_space<vmem>>, %arg7: memref<16x32xf32, #tpu.memory_space<vmem>>) attributes {dimension_semantics = [#tpu.dimension_semantics<parallel>, #tpu.dimension_semantics<parallel>, #tpu.dimension_semantics<arbitrary>], iteration_bounds = array<i64: 1, 1, 1>, scalar_prefetch = 0 : i64, scratch_operands = 1 : i64, tpu.core_type = #tpu.core_type<tc>, window_params = [{transform_indices = @transform_0, window_bounds = array<i64: 16, 32>}, {transform_indices = @transform_1, window_bounds = array<i64: 32, 32>}, {transform_indices = @transform_2, window_bounds = array<i64: 1, 32>}, {transform_indices = @transform_3, window_bounds = array<i64: 16, 32>}]} {
    %c0_i32 = arith.constant 0 : i32
    %0 = arith.cmpi eq, %arg2, %c0_i32 : i32
    %1 = arith.extui %0 : i1 to i32
    %c0_i32_0 = arith.constant 0 : i32
    %2 = arith.cmpi ne, %1, %c0_i32_0 : i32
    scf.if %2 {
      %cst_10 = arith.constant 0.000000e+00 : f32
      %12 = vector.broadcast %cst_10 : f32 to vector<16x32xf32>
      %c0_11 = arith.constant 0 : index
      %c0_12 = arith.constant 0 : index
      %13 = vector.load %arg7[%c0_11, %c0_12] : memref<16x32xf32, #tpu.memory_space<vmem>>, vector<16x32xf32>
      tpu.vector_store %arg7[%c0_11, %c0_12], %12 {strides = array<i32>} : memref<16x32xf32, #tpu.memory_space<vmem>>, vector<16x32xf32>,
    } else {
    }
    %c0 = arith.constant 0 : index
    %c0_1 = arith.constant 0 : index
    %3 = vector.load %arg7[%c0, %c0_1] : memref<16x32xf32, #tpu.memory_space<vmem>>, vector<16x32xf32>
    %c0_2 = arith.constant 0 : index
    %c0_3 = arith.constant 0 : index
    %4 = vector.load %arg3[%c0_2, %c0_3] : memref<16x32xf32, #tpu.memory_space<vmem>>, vector<16x32xf32>
    %c0_4 = arith.constant 0 : index
    %c0_5 = arith.constant 0 : index
    %5 = vector.load %arg4[%c0_4, %c0_5] : memref<32x32xf32, #tpu.memory_space<vmem>>, vector<32x32xf32>
    %cst = arith.constant dense<0.000000e+00> : vector<16x32xf32>
    %6 = tpu.matmul %4, %5, %cst {dimension_numbers = #tpu.dot_dimension_numbers<[1], [1], [0], [0], [0, 0, 1, 0], [], []>} : vector<16x32xf32>, vector<32x32xf32>, vector<16x32xf32> -> vector<16x32xf32>
    %7 = arith.addf %3, %6 : vector<16x32xf32>
    %c0_6 = arith.constant 0 : index
    %c0_7 = arith.constant 0 : index
    %8 = vector.load %arg7[%c0_6, %c0_7] : memref<16x32xf32, #tpu.memory_space<vmem>>, vector<16x32xf32>
    tpu.vector_store %arg7[%c0_6, %c0_7], %7 {strides = array<i32>} : memref<16x32xf32, #tpu.memory_space<vmem>>, vector<16x32xf32>,
    %c0_i32_8 = arith.constant 0 : i32
    %9 = arith.cmpi eq, %arg2, %c0_i32_8 : i32
    %10 = arith.extui %9 : i1 to i32
    %c0_i32_9 = arith.constant 0 : i32
    %11 = arith.cmpi ne, %10, %c0_i32_9 : i32
    scf.if %11 {
      %c0_10 = arith.constant 0 : index
      %c0_11 = arith.constant 0 : index
      %12 = vector.load %arg7[%c0_10, %c0_11] : memref<16x32xf32, #tpu.memory_space<vmem>>, vector<16x32xf32>
      %c0_12 = arith.constant 0 : index
      %c0_13 = arith.constant 0 : index
      %13 = vector.load %arg5[%c0_12, %c0_13] : memref<1x32xf32, #tpu.memory_space<vmem>>, vector<1x32xf32>
      %14 = vector.broadcast %13 : vector<1x32xf32> to vector<16x32xf32>
      %15 = arith.addf %12, %14 : vector<16x32xf32>
      %c0_14 = arith.constant 0 : index
      %c0_15 = arith.constant 0 : index
      %16 = vector.load %arg6[%c0_14, %c0_15] : memref<16x32xf32, #tpu.memory_space<vmem>>, vector<16x32xf32>
      tpu.vector_store %arg6[%c0_14, %c0_15], %15 {strides = array<i32>} : memref<16x32xf32, #tpu.memory_space<vmem>>, vector<16x32xf32>,
    } else {
    }
    return
  }
  func.func @transform_0(%arg0: i32, %arg1: i32, %arg2: i32) -> (i32, i32) {
    %c0_i32 = arith.constant 0 : i32
    return %arg0, %arg2 : i32, i32
  }
  func.func @transform_1(%arg0: i32, %arg1: i32, %arg2: i32) -> (i32, i32) {
    %c0_i32 = arith.constant 0 : i32
    return %arg1, %arg2 : i32, i32
  }
  func.func @transform_2(%arg0: i32, %arg1: i32, %arg2: i32) -> (i32, i32) {
    %c0_i32 = arith.constant 0 : i32
    %c0_i32_0 = arith.constant 0 : i32
    return %c0_i32, %arg1 : i32, i32
  }
  func.func @transform_3(%arg0: i32, %arg1: i32, %arg2: i32) -> (i32, i32) {
    %c0_i32 = arith.constant 0 : i32
    return %arg0, %arg1 : i32, i32
  }
}

</mosaic_0001>

<bundles_post_ra>
// kernel: tpu_custom_call.1
= control target key start
LH: loop header
LB: loop body
LE: loop exit
PB: predicated region body
PF: predicated region fallthrough
CT: control target
= control target key end

     0   :  { %8 = vsyncpa [#allocation4], 0  ;;  %s299_s0 = inlined_call_operand.hbm [shape: f32[16,32], index: 0, kind: input, shape index: {}]   ;;  %s300_s1 = inlined_call_operand.hbm [shape: f32[32,32], index: 1, kind: input, shape index: {}]   ;;  %s301_s2 = inlined_call_operand.vmem [shape: f32[1,32], index: 2, kind: input, shape index: {}]   ;;  %s302_s3 = inlined_call_operand.hbm [shape: f32[16,32], index: 3, kind: output, shape index: {}]  }
   0x1   :  { %9 = vsyncpa [#allocation7], 0 }
   0x2   :  { %10 = vsyncpa [#allocation5], 0  ;;  %s15_s14 = sshll.u32 %s299_s0, 4  ;;  %s236_s15 = smov [#allocation3]   ;;  %s16_s14 = int_to_ptr.hbm [resolvable:$true] %s15_s14 }
   0x3   :  { %s17_s16 = sshll.u32 %s236_s15, 4  ;;  %s28_s19 = sshll.u32 %s300_s1, 4  ;;  %s18_s16 = int_to_ptr.vmem [resolvable:$true] %s17_s16  ;;  %s29_s19 = int_to_ptr.hbm [resolvable:$true] %s28_s19 }
   0x4   :  { %s237_s20 = smov 128   ;;  %s238_s21 = smov 8  }
   0x5   :  { %23 = dma.hbm_to_vmem [thread:$0]  %s16_s14, 256, %s18_s16, [#allocation4], %s237_s20, %s237_s20, %s238_s21  }
   0x6   :  { %s239_s22 = smov [#allocation6]  }
   0x7   :  { %s30_s23 = sshll.u32 %s239_s22, 4  ;;  %s31_s23 = int_to_ptr.vmem [resolvable:$true] %s30_s23 }
   0x8   :  { %36 = dma.hbm_to_vmem [thread:$0]  %s29_s19, 512, %s31_s23, [#allocation7], %s237_s20, %s237_s20, %s238_s21  }
   0x9   :  { %230 = dma.done.wait [#allocation4], 256  }
   0xa   :  { %231 = vsyncadd [#allocation4], 4294967040 }
   0xb   :  { %232 = dma.done.wait [#allocation7], 512  }
   0xc   :  { %233 = vsyncadd [#allocation7], 4294966784  ;;  %vm51_vm0 = vcmask 261120   ;;  %v240_v0 = vmov 0.0   ;;  %v61_v1 = vld [vmem:[#allocation6 + $0x18] sm:$0xff]  ;;  %v60_v2 = vld [vmem:[#allocation6 + $0x10] sm:$0xff] }
   0xd   :  { %52 = vst.msk [vmem:[#allocation2] sm:$0xff] %vm51_vm0, %v240_v0  ;;  %141 = vmatpush.xpose.msk.msra.mxu0 %vm51_vm0, %v61_v1  ;;  %147 = vmatpush.xpose.msk.msra.mxu1 %vm51_vm0, %v61_v1  ;;  %v59_v3 = vld [vmem:[#allocation6 + $0x8] sm:$0xff]  ;;  %v58_v4 = vld [vmem:[#allocation6] sm:$0xff]  ;;  %v56_v5 = vld [vmem:[#allocation3] sm:$0xff]  ;;  %s241_s24 = smov [#allocation8]   ;;  %s127_s28 = sshll.u32 %s302_s3, 4  ;;  %s128_s28 = int_to_ptr.hbm [resolvable:$true] %s127_s28 }
   0xe   :  { %53 = vst.msk [vmem:[#allocation2 + $0x8] sm:$0xff] %vm51_vm0, %v240_v0  ;;  %v57_v6 = vld [vmem:[#allocation3 + $0x8] sm:$0xff]  ;;  %v157_v13 = vld [vmem:[%s301_s2] ss:$0 sm:$0xff]  ;;  %s125_s25 = sshll.u32 %s241_s24, 4  ;;  %s126_s25 = int_to_ptr.vmem [resolvable:$true] %s125_s25 }
  0x11   :  { %142 = vmatpush.xpose.msk.msra.mxu0 %vm51_vm0, %v60_v2  ;;  %148 = vmatpush.xpose.msk.msra.mxu1 %vm51_vm0, %v60_v2 }
  0x14   :  { %v54_v7 = vld [vmem:[#allocation2] sm:$0xff] }
  0x15   :  { %143 = vmatpush.xpose.msk.msra.mxu0 %vm51_vm0, %v59_v3  ;;  %149 = vmatpush.xpose.msk.msra.mxu1 %vm51_vm0, %v59_v3  ;;  %v55_v8 = vld [vmem:[#allocation2 + $0x8] sm:$0xff] }
  0x19   :  { %144 = vmatpush.xpose.msk.msra.mxu0 %vm51_vm0, %v58_v4  ;;  %150 = vmatpush.xpose.msk.msra.mxu1 %vm51_vm0, %v58_v4 }
  0x1c   :  { %145 = vmatmul.msk.f32.vlgmr.msra.gmra.mxu0 %vm51_vm0, %v56_v5  ;;  %146 = vmatmul.msk.f32.vlgmr.msra.gmra.mxu1 %vm51_vm0, %v57_v6 }
  0x99   :  { %v98_v9 = vpop.f32.mrf.mxu0  ;;  %v101_v10 = vpop.f32.mrf.mxu1 }
  0x9a   :  { %v104_v11 = vadd.f32 %v98_v9, %v54_v7  ;;  %v105_v12 = vadd.f32 %v101_v10, %v55_v8 }
  0x9c   :  { %106 = vst.msk [vmem:[#allocation2] sm:$0xff] %vm51_vm0, %v104_v11 }
  0x9d   :  { %107 = vst.msk [vmem:[#allocation2 + $0x8] sm:$0xff] %vm51_vm0, %v105_v12 }
  0xa3   :  { %v111_v14 = vld [vmem:[#allocation2] sm:$0xff] }
  0xa4   :  { %v112_v15 = vld [vmem:[#allocation2 + $0x8] sm:$0xff]  ;;  %v117_v16 = vadd.f32 %v157_v13, %v111_v14 }
  0xa5   :  { %v118_v17 = vadd.f32 %v157_v13, %v112_v15 }
  0xa6   :  { %119 = vst.msk [vmem:[#allocation8] sm:$0xff] %vm51_vm0, %v117_v16 }
  0xa7   :  { %120 = vst.msk [vmem:[#allocation8 + $0x8] sm:$0xff] %vm51_vm0, %v118_v17 }
  0xa8   :  { %133 = dma.vmem_to_hbm [thread:$0]  %s126_s25, 256, %s128_s28, [#allocation5], %s237_s20, %s237_s20, %s238_s21  }
  0xa9   :  { %234 = dma.done.wait [#allocation5], 256  }
  0xaa   :  { %235 = vsyncadd [#allocation5], 4294967040 }
  0xab   :  { %138 = vsyncpa [#allocation4], 1 }
  0xac   :  { %139 = vsyncpa [#allocation7], 1 }
  0xad   :  { %140 = vsyncpa [#allocation5], 1 }

</bundles_post_ra>
